<compile_context>
chip_gen: v7x
topology: tpu7x:2x2x1
jax: 0.10.0
libtpu: 0.0.40
codegen_flags: <defaults>
</compile_context>

<pallas_src>
import functools

import jax
import jax.numpy as jnp
from jax.experimental import pallas as pl
from jax.experimental.pallas import tpu as pltpu

# Logical dims; only the hidden dim is padded (100 -> 128) for lane alignment.
D_IN, D_H, D_OUT = 300, 100, 4
D_H_P = 128


def dnn_kernel(x_ref, w1_ref, b1_ref, w2_ref, b2_ref, w3_ref, b3_ref, o_ref):
    # x: (TB, 300) f32 streamed from HBM; cast to bf16 on the VPU for the MXU.
    x = x_ref[...].astype(jnp.bfloat16)

    # hidden1: (TB,300)bf16 @ (300,128)bf16 -> f32 acc; bias/ReLU in f32.
    h = jnp.dot(x, w1_ref[...], preferred_element_type=jnp.float32)
    h = jnp.maximum(h + b1_ref[...], 0.0)          # dropout = identity (eval)

    # hidden2: (TB,128) @ (128,128)
    h = jnp.dot(h.astype(jnp.bfloat16), w2_ref[...],
                preferred_element_type=jnp.float32)
    h = jnp.maximum(h + b2_ref[...], 0.0)          # dropout = identity (eval)

    # hidden3: (TB,128) @ (128,4) -> logits over the 4 real classes only.
    logits = jnp.dot(h.astype(jnp.bfloat16), w3_ref[...],
                     preferred_element_type=jnp.float32)
    logits = logits + b3_ref[...]                  # (TB, 4)

    # Numerically stable softmax over the (unpadded) class axis, exact divide.
    m = jnp.max(logits, axis=1, keepdims=True)
    e = jnp.exp(logits - m)
    o_ref[...] = e / jnp.sum(e, axis=1, keepdims=True)


def _round_up(n, m):
    return (n + m - 1) // m * m


def pad_params(params):
    """Pad hidden dims to 128 lanes; weights bf16 (MXU), biases f32 (VPU)."""
    w1, b1, w2, b2, w3, b3 = params
    w1p = jnp.pad(w1, ((0, 0), (0, D_H_P - D_H))).astype(jnp.bfloat16)      # (300,128)
    b1p = jnp.pad(b1, ((0, 0), (0, D_H_P - D_H)))                           # (1,128)
    w2p = jnp.pad(w2, ((0, D_H_P - D_H), (0, D_H_P - D_H))).astype(jnp.bfloat16)  # (128,128)
    b2p = jnp.pad(b2, ((0, 0), (0, D_H_P - D_H)))                           # (1,128)
    w3p = jnp.pad(w3, ((0, D_H_P - D_H), (0, 0))).astype(jnp.bfloat16)      # (128,4)
    b3p = b3                                                                # (1,4)
    return w1p, b1p, w2p, b2p, w3p, b3p


@functools.partial(jax.jit, static_argnames=("tb",))
def dnn_forward(x, padded_params, *, tb=2048):
    w1p, b1p, w2p, b2p, w3p, b3p = padded_params
    B = x.shape[0]

    # Batch tile: sublane-aligned, capped at tb, and split >=2 ways when B > 8
    # so the "parallel" batch axis actually shards across both v7x TensorCores.
    TB = max(8, min(tb, _round_up(pl.cdiv(B, 2), 8)))
    grid = (pl.cdiv(B, TB),)

    flops = 2 * B * (D_IN * D_H_P + D_H_P * D_H_P + D_H_P * D_OUT)
    bytes_accessed = (x.size * x.dtype.itemsize
                      + B * D_OUT * 4
                      + sum(p.size * p.dtype.itemsize for p in padded_params))
    cost = pl.CostEstimate(flops=flops,
                           transcendentals=B * D_OUT,
                           bytes_accessed=bytes_accessed)

    const = lambda i: (0, 0)                  # weights/biases stay VMEM-resident
    out = pl.pallas_call(
        dnn_kernel,
        out_shape=jax.ShapeDtypeStruct((B, D_OUT), jnp.float32),
        grid_spec=pltpu.PrefetchScalarGridSpec(
            num_scalar_prefetch=0,
            grid=grid,
            in_specs=[
                pl.BlockSpec((TB, D_IN), lambda i: (i, 0)),     # x: streamed f32
                pl.BlockSpec((D_IN, D_H_P), const),             # w1
                pl.BlockSpec((1, D_H_P), const),                # b1
                pl.BlockSpec((D_H_P, D_H_P), const),            # w2
                pl.BlockSpec((1, D_H_P), const),                # b2
                pl.BlockSpec((D_H_P, D_OUT), const),            # w3
                pl.BlockSpec((1, D_OUT), const),                # b3
            ],
            out_specs=pl.BlockSpec((TB, D_OUT), lambda i: (i, 0)),
        ),
        compiler_params=pltpu.CompilerParams(
            dimension_semantics=("parallel",),
            vmem_limit_bytes=32 * 1024 * 1024,   # fits large TB on v5e too
        ),
        cost_estimate=cost,
    )(x, w1p, b1p, w2p, b2p, w3p, b3p)
    return out


def init_params(key):
    """Deterministic init mimicking torch.nn.Linear uniform(-1/sqrt(in), 1/sqrt(in))."""
    sizes = [(D_IN, D_H), (D_H, D_H), (D_H, D_OUT)]
    params = []
    for fin, fout in sizes:
        kw, kb, key = jax.random.split(key, 3)
        bound = 1.0 / (fin ** 0.5)
        w = jax.random.uniform(kw, (fin, fout), jnp.float32, -bound, bound)
        b = jax.random.uniform(kb, (1, fout), jnp.float32, -bound, bound)
        params += [w, b]
    return tuple(params)


def dnn_reference(x, params):
    """Pure-JAX f32 reference for correctness check."""
    w1, b1, w2, b2, w3, b3 = params
    h = jnp.maximum(x @ w1 + b1, 0.0)
    h = jnp.maximum(h @ w2 + b2, 0.0)
    logits = h @ w3 + b3
    return jax.nn.softmax(logits, axis=1)


if __name__ == "__main__":
    key = jax.random.PRNGKey(0)
    kx, kx2, kp = jax.random.split(key, 3)

    params = init_params(kp)
    pparams = pad_params(params)

    # Small-batch check (single grid step).
    B = 8
    x = jax.random.normal(kx, (B, D_IN), jnp.float32)
    out = jax.block_until_ready(dnn_forward(x, pparams))
    ref = dnn_reference(x, params)
    assert out.shape == (B, D_OUT)
    assert jnp.allclose(jnp.sum(out, axis=1), 1.0, atol=1e-3)
    # bf16 MXU operands -> relaxed tolerance vs f32 reference.
    assert jnp.allclose(out, ref, atol=2e-2)

    # Larger batch exercises the multi-tile grid and the partial last block
    # (B=1000, TB=504 -> 2 grid steps, second block masked on read/write).
    B2 = 1000
    x2 = jax.random.normal(kx2, (B2, D_IN), jnp.float32)
    out2 = jax.block_until_ready(dnn_forward(x2, pparams))
    ref2 = dnn_reference(x2, params)
    assert out2.shape == (B2, D_OUT)
    assert jnp.allclose(jnp.sum(out2, axis=1), 1.0, atol=1e-3)
    assert jnp.allclose(out2, ref2, atol=2e-2)

    print("KERNEL_OK")
</pallas_src>

<mosaic_0001>
module attributes {stable_mosaic.version = 11 : i64} {
  func.func @dnn_kernel(%arg0: i32, %arg1: memref<8x300xf32, #tpu.memory_space<vmem>>, %arg2: memref<300x128xbf16, #tpu.memory_space<vmem>>, %arg3: memref<1x128xf32, #tpu.memory_space<vmem>>, %arg4: memref<128x128xbf16, #tpu.memory_space<vmem>>, %arg5: memref<1x128xf32, #tpu.memory_space<vmem>>, %arg6: memref<128x4xbf16, #tpu.memory_space<vmem>>, %arg7: memref<1x4xf32, #tpu.memory_space<vmem>>, %arg8: memref<8x4xf32, #tpu.memory_space<vmem>>) attributes {dimension_semantics = [#tpu.dimension_semantics<parallel>], iteration_bounds = array<i64: 1>, scalar_prefetch = 0 : i64, scratch_operands = 0 : i64, tpu.core_type = #tpu.core_type<tc>, window_params = [{transform_indices = @transform_0, window_bounds = array<i64: 8, 300>}, {pipeline_mode = #tpu.pipeline_mode<synchronous>, transform_indices = @transform_1, window_bounds = array<i64: 300, 128>}, {pipeline_mode = #tpu.pipeline_mode<synchronous>, transform_indices = @transform_2, window_bounds = array<i64: 1, 128>}, {pipeline_mode = #tpu.pipeline_mode<synchronous>, transform_indices = @transform_3, window_bounds = array<i64: 128, 128>}, {pipeline_mode = #tpu.pipeline_mode<synchronous>, transform_indices = @transform_4, window_bounds = array<i64: 1, 128>}, {pipeline_mode = #tpu.pipeline_mode<synchronous>, transform_indices = @transform_5, window_bounds = array<i64: 128, 4>}, {pipeline_mode = #tpu.pipeline_mode<synchronous>, transform_indices = @transform_6, window_bounds = array<i64: 1, 4>}, {transform_indices = @transform_7, window_bounds = array<i64: 8, 4>}]} {
    %c0 = arith.constant 0 : index
    %c0_0 = arith.constant 0 : index
    %0 = vector.load %arg1[%c0, %c0_0] : memref<8x300xf32, #tpu.memory_space<vmem>>, vector<8x300xf32>
    %1 = arith.truncf %0 : vector<8x300xf32> to vector<8x300xbf16>
    %c0_1 = arith.constant 0 : index
    %c0_2 = arith.constant 0 : index
    %2 = vector.load %arg2[%c0_1, %c0_2] : memref<300x128xbf16, #tpu.memory_space<vmem>>, vector<300x128xbf16>
    %cst = arith.constant dense<0.000000e+00> : vector<8x128xf32>
    %3 = tpu.matmul %1, %2, %cst {dimension_numbers = #tpu.dot_dimension_numbers<[1], [0], [0], [1], [0, 0, 1, 1], [], []>} : vector<8x300xbf16>, vector<300x128xbf16>, vector<8x128xf32> -> vector<8x128xf32>
    %c0_3 = arith.constant 0 : index
    %c0_4 = arith.constant 0 : index
    %4 = vector.load %arg3[%c0_3, %c0_4] : memref<1x128xf32, #tpu.memory_space<vmem>>, vector<1x128xf32>
    %5 = vector.broadcast %4 : vector<1x128xf32> to vector<8x128xf32>
    %6 = arith.addf %3, %5 : vector<8x128xf32>
    %cst_5 = arith.constant 0.000000e+00 : f32
    %7 = vector.broadcast %cst_5 : f32 to vector<8x128xf32>
    %8 = arith.maximumf %6, %7 : vector<8x128xf32>
    %9 = arith.truncf %8 : vector<8x128xf32> to vector<8x128xbf16>
    %c0_6 = arith.constant 0 : index
    %c0_7 = arith.constant 0 : index
    %10 = vector.load %arg4[%c0_6, %c0_7] : memref<128x128xbf16, #tpu.memory_space<vmem>>, vector<128x128xbf16>
    %cst_8 = arith.constant dense<0.000000e+00> : vector<8x128xf32>
    %11 = tpu.matmul %9, %10, %cst_8 {dimension_numbers = #tpu.dot_dimension_numbers<[1], [0], [0], [1], [0, 0, 1, 1], [], []>} : vector<8x128xbf16>, vector<128x128xbf16>, vector<8x128xf32> -> vector<8x128xf32>
    %c0_9 = arith.constant 0 : index
    %c0_10 = arith.constant 0 : index
    %12 = vector.load %arg5[%c0_9, %c0_10] : memref<1x128xf32, #tpu.memory_space<vmem>>, vector<1x128xf32>
    %13 = vector.broadcast %12 : vector<1x128xf32> to vector<8x128xf32>
    %14 = arith.addf %11, %13 : vector<8x128xf32>
    %cst_11 = arith.constant 0.000000e+00 : f32
    %15 = vector.broadcast %cst_11 : f32 to vector<8x128xf32>
    %16 = arith.maximumf %14, %15 : vector<8x128xf32>
    %17 = arith.truncf %16 : vector<8x128xf32> to vector<8x128xbf16>
    %c0_12 = arith.constant 0 : index
    %c0_13 = arith.constant 0 : index
    %18 = vector.load %arg6[%c0_12, %c0_13] : memref<128x4xbf16, #tpu.memory_space<vmem>>, vector<128x4xbf16>
    %cst_14 = arith.constant dense<0.000000e+00> : vector<8x4xf32>
    %19 = tpu.matmul %17, %18, %cst_14 {dimension_numbers = #tpu.dot_dimension_numbers<[1], [0], [0], [1], [0, 0, 1, 1], [], []>} : vector<8x128xbf16>, vector<128x4xbf16>, vector<8x4xf32> -> vector<8x4xf32>
    %c0_15 = arith.constant 0 : index
    %c0_16 = arith.constant 0 : index
    %20 = vector.load %arg7[%c0_15, %c0_16] : memref<1x4xf32, #tpu.memory_space<vmem>>, vector<1x4xf32>
    %21 = vector.broadcast %20 : vector<1x4xf32> to vector<8x4xf32>
    %22 = arith.addf %19, %21 : vector<8x4xf32>
    %cst_17 = arith.constant dense<0xFF800000> : vector<8xf32>
    %23 = vector.multi_reduction <maximumf>, %22, %cst_17 [1] : vector<8x4xf32> to vector<8xf32>
    %24 = vector.shape_cast %23 : vector<8xf32> to vector<8x1xf32>
    %25 = vector.broadcast %24 : vector<8x1xf32> to vector<8x4xf32>
    %26 = arith.subf %22, %25 : vector<8x4xf32>
    %27 = math.exp %26 : vector<8x4xf32>
    %cst_18 = arith.constant dense<0.000000e+00> : vector<8xf32>
    %28 = vector.multi_reduction <add>, %27, %cst_18 [1] : vector<8x4xf32> to vector<8xf32>
    %29 = vector.shape_cast %28 : vector<8xf32> to vector<8x1xf32>
    %30 = vector.broadcast %29 : vector<8x1xf32> to vector<8x4xf32>
    %31 = arith.divf %27, %30 : vector<8x4xf32>
    %c0_19 = arith.constant 0 : index
    %c0_20 = arith.constant 0 : index
    %32 = vector.load %arg8[%c0_19, %c0_20] : memref<8x4xf32, #tpu.memory_space<vmem>>, vector<8x4xf32>
    tpu.vector_store %arg8[%c0_19, %c0_20], %31 {strides = array<i32>} : memref<8x4xf32, #tpu.memory_space<vmem>>, vector<8x4xf32>,
    return
  }
  func.func @transform_0(%arg0: i32) -> (i32, i32) {
    %c0_i32 = arith.constant 0 : i32
    %c0_i32_0 = arith.constant 0 : i32
    return %arg0, %c0_i32 : i32, i32
  }
  func.func @transform_1(%arg0: i32) -> (i32, i32) {
    %c0_i32 = arith.constant 0 : i32
    %c0_i32_0 = arith.constant 0 : i32
    %c0_i32_1 = arith.constant 0 : i32
    return %c0_i32, %c0_i32_0 : i32, i32
  }
  func.func @transform_2(%arg0: i32) -> (i32, i32) {
    %c0_i32 = arith.constant 0 : i32
    %c0_i32_0 = arith.constant 0 : i32
    %c0_i32_1 = arith.constant 0 : i32
    return %c0_i32, %c0_i32_0 : i32, i32
  }
  func.func @transform_3(%arg0: i32) -> (i32, i32) {
    %c0_i32 = arith.constant 0 : i32
    %c0_i32_0 = arith.constant 0 : i32
    %c0_i32_1 = arith.constant 0 : i32
    return %c0_i32, %c0_i32_0 : i32, i32
  }
  func.func @transform_4(%arg0: i32) -> (i32, i32) {
    %c0_i32 = arith.constant 0 : i32
    %c0_i32_0 = arith.constant 0 : i32
    %c0_i32_1 = arith.constant 0 : i32
    return %c0_i32, %c0_i32_0 : i32, i32
  }
  func.func @transform_5(%arg0: i32) -> (i32, i32) {
    %c0_i32 = arith.constant 0 : i32
    %c0_i32_0 = arith.constant 0 : i32
    %c0_i32_1 = arith.constant 0 : i32
    return %c0_i32, %c0_i32_0 : i32, i32
  }
  func.func @transform_6(%arg0: i32) -> (i32, i32) {
    %c0_i32 = arith.constant 0 : i32
    %c0_i32_0 = arith.constant 0 : i32
    %c0_i32_1 = arith.constant 0 : i32
    return %c0_i32, %c0_i32_0 : i32, i32
  }
  func.func @transform_7(%arg0: i32) -> (i32, i32) {
    %c0_i32 = arith.constant 0 : i32
    %c0_i32_0 = arith.constant 0 : i32
    return %arg0, %c0_i32 : i32, i32
  }
}

</mosaic_0001>

<bundles_post_ra>
// kernel: dnn_forward.1
= control target key start
LH: loop header
LB: loop body
LE: loop exit
PB: predicated region body
PF: predicated region fallthrough
CT: control target
= control target key end

     0   :  { %12 = vsyncpa [#allocation3], 0  ;;  %s941_s0 = inlined_call_operand.hbm [shape: f32[8,300], index: 0, kind: input, shape index: {}]   ;;  %s942_s1 = inlined_call_operand.hbm [shape: bf16[300,128], index: 1, kind: input, shape index: {}]   ;;  %s943_s2 = inlined_call_operand.vmem [shape: f32[1,128], index: 2, kind: input, shape index: {}]   ;;  %s944_s3 = inlined_call_operand.vmem [shape: bf16[128,128], index: 3, kind: input, shape index: {}]   ;;  %s945_s4 = inlined_call_operand.vmem [shape: f32[1,128], index: 4, kind: input, shape index: {}]   ;;  %s946_s5 = inlined_call_operand.vmem [shape: bf16[128,4], index: 5, kind: input, shape index: {}]   ;;  %s947_s6 = inlined_call_operand.vmem [shape: f32[1,4], index: 6, kind: input, shape index: {}]   ;;  %s948_s7 = inlined_call_operand.vmem [shape: f32[8,4], index: 7, kind: output, shape index: {}]  }
   0x1   :  { %13 = vsyncpa [#allocation5], 0  ;;  %s776_s24 = smov [#allocation2]   ;;  %s777_s26 = smov [#allocation4]  }
   0x2   :  { %s20_s25 = sshll.u32 %s776_s24, 4  ;;  %s29_s27 = sshll.u32 %s777_s26, 4  ;;  %s21_s25 = int_to_ptr.vmem [resolvable:$true] %s20_s25  ;;  %s822_s27 = int_to_ptr.vmem [resolvable:$true] %s29_s27 }
   0x3   :  { %s728_s30 = scalar_lea.hbm %s941_s0, 384 }
   0x4   :  { %p729_p0 = scmp.ne.s32.totalorder %s941_s0, %s728_s30  ;;  %p732_p1 = scmp.lt.u32.totalorder %s728_s30, %s941_s0 }
   0x6   :  { %p734_p2 = pnand %p732_p1, %p729_p0 }
   0x8   :  { %737 = shalt.err (!%p734_p2)
}
   0x9   :  { %s738_s12 = scalar_lea.vmem %s21_s25, 384  ;;  %p743_p4 = scmp.lt.s32.totalorder %s21_s25, %s21_s25 }
   0xa   :  { %p739_p3 = scmp.ne.s32.totalorder %s21_s25, %s738_s12  ;;  %p744_p5 = scmp.lt.s32.totalorder %s738_s12, %s738_s12 }
   0xc   :  { %p745_p6 = por %p744_p5, %p743_p4 }
   0xe   :  { %p746_p7 = pnand %p745_p6, %p739_p3 }
  0x10   :  { %749 = shalt.err (!%p746_p7)
}
  0x11   :  { %23 = dma.hbm_to_vmem [thread:$0]  %s941_s0, 384, %s21_s25, [#allocation3]  }
  0x12   :  { %s750_s17 = scalar_lea.hbm %s942_s1, 2432 }
  0x13   :  { %p751_p8 = scmp.ne.s32.totalorder %s942_s1, %s750_s17  ;;  %p754_p9 = scmp.lt.u32.totalorder %s750_s17, %s942_s1 }
  0x15   :  { %p756_p10 = pnand %p754_p9, %p751_p8 }
  0x17   :  { %759 = shalt.err (!%p756_p10)
}
  0x18   :  { %s760_s22 = scalar_lea.vmem %s822_s27, 2432  ;;  %p765_p12 = scmp.lt.s32.totalorder %s822_s27, %s822_s27 }
  0x19   :  { %p761_p11 = scmp.ne.s32.totalorder %s822_s27, %s760_s22  ;;  %p766_p13 = scmp.lt.s32.totalorder %s760_s22, %s760_s22 }
  0x1b   :  { %p767_p0 = por %p766_p13, %p765_p12 }
  0x1d   :  { %p768_p1 = pnand %p767_p0, %p761_p11 }
  0x1f   :  { %771 = shalt.err (!%p768_p1)
}
  0x20   :  { %s778_s0 = smov 64   ;;  %s779_s23 = smov 4  }
  0x21   :  { %35 = dma.hbm_to_vmem [thread:$0]  %s942_s1, 2432, %s822_s27, [#allocation5], %s778_s0, %s778_s0, %s779_s23  }
  0x22   :  { %772 = dma.done.wait [#allocation3], 384  }
  0x23   :  { %773 = vsyncadd [#allocation3], 4294966912 }
  0x24   :  { %774 = dma.done.wait [#allocation5], 2432  }
  0x25   :  { %775 = vsyncadd [#allocation5], 4294964864  ;;  %v780_v0 = vmov 0.0   ;;  %vm781_vm0 = vmmov 0   ;;  %v689_v1 = vld [vmem:[#allocation4 + $0x40] sm:$0xff]   ;;  %v691_v3 = vld [vmem:[#allocation4 + $0x48] sm:$0xff]  }
  0x26   :  { %633 = vmatprep.subr.bf16.mxu1 %v780_v0  ;;  %639 = vmatprep.mubr.msk.bf16.mxu1 %vm781_vm0, %v780_v0  ;;  %v690_v2 = vld [vmem:[#allocation4] sm:$0xff]   ;;  %v692_v4 = vld [vmem:[#allocation4 + $0x8] sm:$0xff]   ;;  %v693_v5 = vld [vmem:[#allocation4 + $0x50] sm:$0xff]   ;;  %vm221_vm1 = vcmask 1045504   ;;  %vm217_vm2 = vcmask 359424   ;;  %vm531_vm3 = vcmask 31744  }
  0x27   :  { %589 = vmatprep.subr.bf16.mxu0 %v689_v1  ;;  %v694_v6 = vld [vmem:[#allocation4 + $0x10] sm:$0xff]   ;;  %v695_v7 = vld [vmem:[#allocation4 + $0x58] sm:$0xff]   ;;  %v697_v9 = vld [vmem:[#allocation4 + $0x60] sm:$0xff]  }
  0x28   :  { %590 = vmatpush3.bf16.msra.mxu0 %v690_v2  ;;  %v696_v8 = vld [vmem:[#allocation4 + $0x18] sm:$0xff]   ;;  %v701_v10 = vld [vmem:[#allocation4 + $0x80] sm:$0xff]   ;;  %v704_v12 = vld [vmem:[#allocation4 + $0x88] sm:$0xff]  }
  0x29   :  { %591 = vmatprep.subr.bf16.mxu0 %v691_v3  ;;  %v698_v11 = vld [vmem:[#allocation4 + $0x20] sm:$0xff]   ;;  %634 = vmatpush3.bf16.msra.mxu1 %v701_v10  ;;  %v699_v13 = vld [vmem:[#allocation4 + $0x68] sm:$0xff]   ;;  %v54_v14 = vld [vmem:[#allocation2 + $0x8] sm:$0xff] }
  0x2a   :  { %635 = vmatprep.subr.bf16.mxu1 %v780_v0  ;;  %v700_v15 = vld [vmem:[#allocation4 + $0x28] sm:$0xff]   ;;  %v57_v16 = vpack.c.bf16 %v54_v14, %v54_v14  ;;  %v707_v17 = vld [vmem:[#allocation4 + $0x90] sm:$0x3f]   ;;  %v55_v18 = vld [vmem:[#allocation2 + $0x10] sm:$0xff] }
  0x2b   :  { %v702_v19 = vld [vmem:[#allocation4 + $0x70] sm:$0xff]   ;;  %v223_v21 = vsel %vm221_vm1, %v707_v17, 0  ;;  %v58_v22 = vpack.c.bf16 %v55_v18, %v55_v18  ;;  %v708_v23 = vld [vmem:[%s944_s3] sm:$0xff]   ;;  %v705_v24 = vld [vmem:[#allocation4 + $0x78] sm:$0xff]  }
  0x2c   :  { %592 = vmatpush3.bf16.msra.mxu0 %v692_v4  ;;  %v703_v20 = vld [vmem:[#allocation4 + $0x30] sm:$0xff]   ;;  %257 = vmatprep.mubr.bf16.mxu0 %v57_v16  ;;  %v706_v26 = vld [vmem:[#allocation4 + $0x38] sm:$0xff]   ;;  %v53_v27 = vld [vmem:[#allocation2] sm:$0xff] }
  0x2d   :  { %593 = vmatprep.subr.bf16.mxu0 %v693_v5  ;;  %636 = vmatpush3.bf16.msra.mxu1 %v704_v12  ;;  %v709_v25 = vld [vmem:[%s944_s3 + $0x8] sm:$0xff]   ;;  %v710_v28 = vld [vmem:[%s944_s3 + $0x10] sm:$0xff]   ;;  %v56_v29 = vpack.c.bf16 %v53_v27, %v53_v27  ;;  %v711_v30 = vld [vmem:[%s944_s3 + $0x18] sm:$0xff]  }
  0x2e   :  { %637 = vmatprep.subr.bf16.mxu1 %v780_v0  ;;  %v712_v31 = vld [vmem:[%s944_s3 + $0x20] sm:$0xff]   ;;  %v713_v32 = vld [vmem:[%s944_s3 + $0x28] sm:$0xff]   ;;  %v714_v33 = vld [vmem:[%s944_s3 + $0x30] sm:$0xff]  }
  0x2f   :  { %v715_v34 = vld [vmem:[%s944_s3 + $0x38] sm:$0xff]   ;;  %v716_v35 = vld [vmem:[%s946_s5] sm:$0xff]   ;;  %v717_v36 = vld [vmem:[%s946_s5 + $0x8] sm:$0xff]  }
  0x30   :  { %594 = vmatpush3.bf16.msra.mxu0 %v694_v6  ;;  %v718_v37 = vld [vmem:[%s946_s5 + $0x10] sm:$0xff]   ;;  %v719_v38 = vld [vmem:[%s946_s5 + $0x18] sm:$0xff]   ;;  %v720_v39 = vld [vmem:[%s946_s5 + $0x20] sm:$0xff]  }
  0x31   :  { %595 = vmatprep.subr.bf16.mxu0 %v695_v7  ;;  %638 = vmatpush3.bf16.msra.mxu1 %v223_v21  ;;  %v721_v40 = vld [vmem:[%s946_s5 + $0x28] sm:$0xff]   ;;  %v550_v47 = vld [vmem:[%s943_s2] ss:$0 sm:$0xff]  ;;  %v722_v55 = vld [vmem:[%s946_s5 + $0x30] sm:$0xff]  }
  0x32   :  { %643 = vmatprep.subr.bf16.mxu1 %v780_v0  ;;  %v723_v56 = vld [vmem:[%s946_s5 + $0x38] sm:$0xff]   ;;  %v571_v57 = vld [vmem:[%s945_s4] ss:$0 sm:$0xff] }
  0x34   :  { %596 = vmatpush3.bf16.msra.mxu0 %v696_v8  ;;  %640 = vmatmul.mubr.msk.bf16.vlgmr.msra.gmra.mrb[0].mxu1 %vm217_vm2, %v58_v22 }
  0x35   :  { %597 = vmatprep.subr.bf16.mxu0 %v697_v9  ;;  %644 = vmatpush3.bf16.msra.mxu1 %v708_v23 }
  0x36   :  { %659 = vmatprep.mubr.msk.bf16.mxu1 %vm781_vm0, %v780_v0  ;;  %645 = vmatprep.subr.bf16.mxu1 %v780_v0 }
  0x38   :  { %598 = vmatpush3.bf16.msra.mxu0 %v698_v11 }
  0x39   :  { %599 = vmatprep.subr.bf16.mxu0 %v699_v13  ;;  %646 = vmatpush3.bf16.msra.mxu1 %v709_v25 }
  0x3a   :  { %647 = vmatprep.subr.bf16.mxu1 %v780_v0 }
  0x3c   :  { %600 = vmatpush3.bf16.msra.mxu0 %v700_v15 }
  0x3d   :  { %601 = vmatprep.subr.bf16.mxu0 %v702_v19  ;;  %648 = vmatpush3.bf16.msra.mxu1 %v710_v28 }
  0x3e   :  { %649 = vmatprep.subr.bf16.mxu1 %v780_v0 }
  0x40   :  { %602 = vmatpush3.bf16.msra.mxu0 %v703_v20 }
  0x41   :  { %603 = vmatprep.subr.bf16.mxu0 %v705_v24  ;;  %650 = vmatpush3.bf16.msra.mxu1 %v711_v30 }
  0x42   :  { %651 = vmatprep.subr.bf16.mxu1 %v780_v0 }
  0x44   :  { %604 = vmatpush3.bf16.msra.mxu0 %v706_v26 }
  0x45   :  { %663 = vmatprep.subr.bf16.mxu0 %v780_v0  ;;  %652 = vmatpush3.bf16.msra.mxu1 %v712_v31 }
  0x46   :  { %653 = vmatprep.subr.bf16.mxu1 %v780_v0 }
  0x47   :  { %258 = vmatmul.mubr.bf16.vlgmr.msra.gmra.mrb[0].mxu0 %v56_v29 }
  0x48   :  { %679 = vmatprep.mubr.msk.bf16.mxu0 %vm781_vm0, %v780_v0  ;;  %664 = vmatpush3.bf16.msra.mxu0 %v716_v35 }
  0x49   :  { %654 = vmatpush3.bf16.msra.mxu1 %v713_v32  ;;  %665 = vmatprep.subr.bf16.mxu0 %v780_v0 }
  0x4a   :  { %655 = vmatprep.subr.bf16.mxu1 %v780_v0 }
  0x4c   :  { %666 = vmatpush3.bf16.msra.mxu0 %v717_v36 }
  0x4d   :  { %656 = vmatpush3.bf16.msra.mxu1 %v714_v33  ;;  %667 = vmatprep.subr.bf16.mxu0 %v780_v0 }
  0x4e   :  { %657 = vmatprep.subr.bf16.mxu1 %v780_v0 }
  0x50   :  { %668 = vmatpush3.bf16.msra.mxu0 %v718_v37 }
  0x51   :  { %658 = vmatpush3.bf16.msra.mxu1 %v715_v34  ;;  %669 = vmatprep.subr.bf16.mxu0 %v780_v0 }
  0x54   :  { %670 = vmatpush3.bf16.msra.mxu0 %v719_v38 }
  0x55   :  { %671 = vmatprep.subr.bf16.mxu0 %v780_v0 }
  0x58   :  { %672 = vmatpush3.bf16.msra.mxu0 %v720_v39 }
  0x59   :  { %673 = vmatprep.subr.bf16.mxu0 %v780_v0 }
  0x5c   :  { %674 = vmatpush3.bf16.msra.mxu0 %v721_v40 }
  0x5d   :  { %675 = vmatprep.subr.bf16.mxu0 %v780_v0 }
  0x60   :  { %676 = vmatpush3.bf16.msra.mxu0 %v722_v55 }
  0x61   :  { %677 = vmatprep.subr.bf16.mxu0 %v780_v0  ;;  %v580_v0 = vld [vmem:[%s947_s6] ss:$0 sm:$0xff] }
  0x64   :  { %678 = vmatpush3.bf16.msra.mxu0 %v723_v56 }
 0x107   :  { %v299_v41 = vpop.f32.mrb[0].mxu1 }
 0x108   :  { %v641_v42 = vpop.f32.mrb[1].mxu1 }
 0x109   :  { %v302_v43 = vpop.f32.mrb[2].mxu1 }
 0x10a   :  { %v642_v44 = vpop.f32.mrb[3].mxu1 }
 0x11a   :  { %v605_v45 = vpop.f32.mrb[0].mxu0 }
 0x11b   :  { %v606_v46 = vpop.f32.mrb[1].mxu0 }
 0x11c   :  { %v607_v48 = vadd.f32 %v606_v46, %v605_v45  ;;  %v608_v49 = vpop.f32.mrb[2].mxu0 }
 0x11d   :  { %v609_v50 = vpop.f32.mrb[3].mxu0 }
 0x11e   :  { %v260_v51 = vadd.f32 %v607_v48, %v550_v47 }
 0x120   :  { %v300_v52 = vadd.f32 %v299_v41, %v260_v51 }
 0x122   :  { %v305_v53 = vmax.f32 %v300_v52, 0.0 }
 0x124   :  { %v306_v54 = vpack.c.bf16 %v305_v53, %v305_v53 }
 0x126   :  { %660 = vmatmul.mubr.bf16.vlgmr.msra.gmra.mrb[4].mxu1 %v306_v54 }
 0x1f9   :  { %v412_v58 = vpop.f32.mrb[4].mxu1 }
 0x1fa   :  { %v413_v59 = vadd.f32 %v571_v57, %v412_v58  ;;  %v661_v60 = vpop.f32.mrb[5].mxu1 }
 0x1fb   :  { %v415_v61 = vpop.f32.mrb[6].mxu1 }
 0x1fc   :  { %v418_v62 = vmax.f32 %v413_v59, 0.0  ;;  %v662_v63 = vpop.f32.mrb[7].mxu1 }
 0x1fe   :  { %v419_v1 = vpack.c.bf16 %v418_v62, %v418_v62 }
 0x200   :  { %680 = vmatmul.mubr.bf16.vlgmr.msra.gmra.mrb[4].mxu0 %v419_v1 }
 0x2d3   :  { %v525_v2 = vpop.f32.mrb[4].mxu0 }
 0x2d4   :  { %v526_v3 = vadd.f32 %v580_v0, %v525_v2  ;;  %v681_v4 = vpop.f32.mrb[5].mxu0 }
 0x2d5   :  { %v528_v5 = vpop.f32.mrb[6].mxu0 }
 0x2d6   :  { %v682_v6 = vpop.f32.mrb[7].mxu0  ;;  %v532_v7 = vsel %vm531_vm3, %v526_v3, -inf }
 0x2d7   :  { %533 = vmax.xlane.f32.xlu0 %v532_v7 }
 0x364   :  { %v534_v8 = vpop.xlane.xlu0 %533 }
 0x365   :  { %v535_v9 = vsub.f32 %v526_v3, %v534_v8 }
 0x367   :  { %v536_v10 = vmul.f32 1.442695, %v535_v9 }
 0x369   :  { %724 = vpow2.f32 %v536_v10 }
 0x373   :  { %v725_v11 = vpop.eup %724 }
 0x374   :  { %v538_v12 = vsel %vm531_vm3, %v725_v11, 0.0 }
 0x375   :  { %539 = vadd.xlane.f32.xlu0 %v538_v12 }
 0x402   :  { %v540_v13 = vpop.xlane.xlu0 %539 }
 0x403   :  { %726 = vrcp.f32 %v540_v13 }
 0x40d   :  { %v727_v14 = vpop.eup %726 }
 0x40e   :  { %v542_v15 = vmul.f32 %v727_v14, %v725_v11 }
 0x410   :  { %543 = vst.msk [vmem:[%s948_s7] sm:$0xff] %vm531_vm3, %v542_v15 }
 0x411   :  { %548 = vsyncpa [#allocation3], 1 }
 0x412   :  { %549 = vsyncpa [#allocation5], 1 }

</bundles_post_ra>
